<compile_context>
chip_gen: v5e
topology: v5e:2x2
jax: 0.10.0
libtpu: 0.0.40
codegen_flags: <defaults>
</compile_context>

<pallas_src>
import jax
import jax.numpy as jnp
from jax.experimental import pallas as pl
from jax.experimental.pallas import tpu as pltpu

_VMEM_LIMIT_BYTES = 32 * 1024 * 1024  # safe scoped-VMEM limit on v5e/v6e/v7x


# ----------------------------- fused Pallas kernel --------------------------

def _build_fused_kernel(ops, n_linear):
    """Kernel applying `ops` (tuple of 'linear'/'relu'/'tanh') to one batch
    tile. Intermediate activations never leave the chip (vregs/VMEM)."""

    def kernel(*refs):
        x_ref = refs[0]
        param_refs = refs[1:1 + 2 * n_linear]
        o_ref = refs[1 + 2 * n_linear]

        y = x_ref[...].astype(jnp.float32)
        li = 0
        for op in ops:
            if op == "linear":
                w_ref, b_ref = param_refs[2 * li], param_refs[2 * li + 1]
                li += 1
                # Weights already bf16 in VMEM (no per-tile repack); bf16 MXU
                # operands with f32 accumulation.
                y = jnp.dot(y.astype(jnp.bfloat16), w_ref[...],
                            preferred_element_type=jnp.float32)
                y = y + b_ref[...].astype(jnp.float32)   # (1, Fout) broadcast, f32 VPU
            elif op == "relu":
                y = jnp.maximum(y, 0.0)                  # epilogue: VPU select
            elif op == "tanh":
                y = jnp.tanh(y)                          # epilogue: EUP slot
            else:
                raise ValueError(f"unknown op {op}")
        o_ref[...] = y.astype(o_ref.dtype)

    return kernel


def _round_up(n, m):
    return ((n + m - 1) // m) * m


def fused_forward(x, ops, params, *, tile_b=512):
    """Run the whole op chain as ONE pallas_call, gridded over batch.

    x:      [B, Fin]  activations (f32 or bf16; output keeps x.dtype)
    ops:    sequence of 'linear' | 'relu' | 'tanh'
    params: list of (w, b) pairs, one per 'linear' op, in order
            (w: bf16 [Fin, Fout], b: f32 [1, Fout])
    """
    B, Fin = x.shape
    widths = [Fin]
    for (w, _b) in params:
        assert w.shape[0] == widths[-1], "feature-width mismatch in op chain"
        widths.append(w.shape[1])
    Fout = widths[-1]

    # ---- batch tile selection: big tiles to amortize per-step overhead, but
    # keep >= 2 grid tiles when possible so v7x's 2 TensorCores share the work.
    tb = min(tile_b, _round_up(B, 8))
    if pl.cdiv(B, tb) < 2 and B > 8:
        tb = _round_up(pl.cdiv(B, 2), 8)

    # ---- VMEM budget gate: single-buffered weights + double-buffered
    # activation I/O tiles + f32 intermediates must fit the scoped limit.
    weight_bytes = sum(int(w.size) * w.dtype.itemsize +
                       int(b.size) * b.dtype.itemsize for (w, b) in params)

    def _act_bytes(t):
        io = 2 * t * Fin * x.dtype.itemsize + 2 * t * Fout * x.dtype.itemsize
        live = 2 * t * max(widths) * 4           # in-kernel f32 intermediates
        return io + live

    budget = _VMEM_LIMIT_BYTES - (2 << 20)       # headroom for compiler scratch
    while tb > 8 and weight_bytes + _act_bytes(tb) > budget:
        tb = max(8, _round_up(tb // 2, 8))
    if weight_bytes + _act_bytes(tb) > budget:
        # TODO(synk): fall back to tiling the output-feature dim (extra grid
        # axis with N-blocked weight index_map) when weights alone overflow
        # VMEM — matters on v7x (64 MiB physical) for large hidden widths.
        raise ValueError("weight set too large for the all-resident VMEM design")

    grid = (pl.cdiv(B, tb),)   # no wrapper-side pad; Pallas handles the partial last tile

    in_specs = [pl.BlockSpec((tb, Fin), lambda i: (i, 0))]
    flat_params = []
    for (w, b) in params:
        fin, fout = w.shape
        # Constant index_map -> stays VMEM-resident across the grid; Buffered(1)
        # because a never-changing block needs no double buffer.
        in_specs.append(pl.BlockSpec((fin, fout), lambda i: (0, 0),
                                     pipeline_mode=pl.Buffered(1)))
        in_specs.append(pl.BlockSpec((1, fout), lambda i: (0, 0),
                                     pipeline_mode=pl.Buffered(1)))
        flat_params += [w, b]

    return pl.pallas_call(
        _build_fused_kernel(tuple(ops), len(params)),
        out_shape=jax.ShapeDtypeStruct((B, Fout), x.dtype),
        grid=grid,
        in_specs=in_specs,
        out_specs=pl.BlockSpec((tb, Fout), lambda i: (i, 0)),
        compiler_params=pltpu.CompilerParams(
            dimension_semantics=("parallel",),   # v7x: 2 TCs split the batch grid
            vmem_limit_bytes=_VMEM_LIMIT_BYTES,
        ),
    )(x, *flat_params)


# --------------------------- Module framework -------------------------------

class Module:
    def forward(self, *inputs):
        raise NotImplementedError

    def backward(self, *gradwrtoutput):
        raise NotImplementedError

    def param(self, eta):
        return []


class Linear(Module):
    OP = "linear"

    def __init__(self, in_features, out_features, key):
        kw, kb = jax.random.split(key)
        scale = 1.0 / jnp.sqrt(jnp.array(in_features, jnp.float32))
        # Weights stored bf16: halves weight DMA bytes / VMEM residency and
        # removes the per-grid-step bf16 repack. Bias stays f32 (f32 epilogue).
        self.w = (jax.random.normal(kw, (in_features, out_features), jnp.float32)
                  * scale).astype(jnp.bfloat16)
        self.b = jax.random.normal(kb, (1, out_features), jnp.float32) * scale

    def forward(self, x):
        # Standalone use still routes through the fused path (large tiles).
        return fused_forward(x, ["linear"], [(self.w, self.b)])

    def param(self, eta):
        return [self.w, self.b]


class ReLU(Module):
    OP = "relu"

    def forward(self, x):
        return fused_forward(x, ["relu"], [])


class Tanh(Module):
    OP = "tanh"

    def forward(self, x):
        return fused_forward(x, ["tanh"], [])


class Sequential(Module):
    """Mirrors the reference Sequential, but fuses the whole forward chain into
    a single Pallas kernel: one launch, weights resident in VMEM, no HBM round
    trips for intermediate activations."""

    def __init__(self, listModules, loss=None, eta=None):
        self.graphModules = listModules
        self.loss = loss
        self.eta = eta

    def forward(self, input):
        ops, params = [], []
        for m in self.graphModules:
            ops.append(m.OP)
            if isinstance(m, Linear):
                params.append((m.w, m.b))
        return fused_forward(input, ops, params)

    # TODO(synk): backward() requires the loss module's gradient chain; only the
    # forward pass is implemented as a Pallas kernel here.
    def backward(self):
        return []

    def param(self):
        for m in self.graphModules:
            m.param(self.eta)
        return []


# ------------------------------ reference ------------------------------------

def _ref_forward(x, modules):
    # Mirrors the kernel's math path (bf16 MXU operands, f32 accumulation,
    # f32 elementwise) so the comparison is apples-to-apples.
    y = x.astype(jnp.float32)
    for m in modules:
        if isinstance(m, Linear):
            y = jnp.dot(y.astype(jnp.bfloat16), m.w,
                        preferred_element_type=jnp.float32) + m.b
        elif isinstance(m, ReLU):
            y = jnp.maximum(y, 0.0)
        elif isinstance(m, Tanh):
            y = jnp.tanh(y)
    return y.astype(x.dtype)


# --------------------------------- main ---------------------------------------

if __name__ == "__main__":
    key = jax.random.PRNGKey(0)
    kx, k1, k2 = jax.random.split(key, 3)

    # Lane-dense features (128 lanes). batch=250 is deliberately NOT a multiple
    # of the tile size to exercise the pad-free partial-last-tile path, and
    # yields a 2-tile grid (both v7x TensorCores get work).
    batch, hidden = 250, 128
    x = jax.random.normal(kx, (batch, hidden), jnp.float32)

    modules = [
        Linear(hidden, hidden, k1),
        ReLU(),
        Linear(hidden, hidden, k2),
        Tanh(),
    ]
    net = Sequential(modules, loss=None, eta=1e-3)

    out = net.forward(x)
    out = jax.block_until_ready(out)

    ref = _ref_forward(x, modules)
    assert out.shape == (batch, hidden)
    assert jnp.allclose(out, ref, atol=1e-2, rtol=1e-2), "mismatch vs reference"

    print("KERNEL_OK")
</pallas_src>

<mosaic_0001>
module attributes {stable_mosaic.version = 11 : i64} {
  func.func @kernel(%arg0: i32, %arg1: memref<128x128xf32, #tpu.memory_space<vmem>>, %arg2: memref<128x128xbf16, #tpu.memory_space<vmem>>, %arg3: memref<1x128xf32, #tpu.memory_space<vmem>>, %arg4: memref<128x128xbf16, #tpu.memory_space<vmem>>, %arg5: memref<1x128xf32, #tpu.memory_space<vmem>>, %arg6: memref<128x128xf32, #tpu.memory_space<vmem>>) attributes {dimension_semantics = [#tpu.dimension_semantics<parallel>], iteration_bounds = array<i64: 2>, scalar_prefetch = 0 : i64, scratch_operands = 0 : i64, tpu.core_type = #tpu.core_type<tc>, window_params = [{transform_indices = @transform_0, window_bounds = array<i64: 128, 128>}, {pipeline_mode = #tpu.pipeline_mode<synchronous>, transform_indices = @transform_1, window_bounds = array<i64: 128, 128>}, {pipeline_mode = #tpu.pipeline_mode<synchronous>, transform_indices = @transform_2, window_bounds = array<i64: 1, 128>}, {pipeline_mode = #tpu.pipeline_mode<synchronous>, transform_indices = @transform_3, window_bounds = array<i64: 128, 128>}, {pipeline_mode = #tpu.pipeline_mode<synchronous>, transform_indices = @transform_4, window_bounds = array<i64: 1, 128>}, {transform_indices = @transform_5, window_bounds = array<i64: 128, 128>}]} {
    %c0 = arith.constant 0 : index
    %c0_0 = arith.constant 0 : index
    %0 = vector.load %arg1[%c0, %c0_0] : memref<128x128xf32, #tpu.memory_space<vmem>>, vector<128x128xf32>
    %1 = arith.truncf %0 : vector<128x128xf32> to vector<128x128xbf16>
    %c0_1 = arith.constant 0 : index
    %c0_2 = arith.constant 0 : index
    %2 = vector.load %arg2[%c0_1, %c0_2] : memref<128x128xbf16, #tpu.memory_space<vmem>>, vector<128x128xbf16>
    %cst = arith.constant dense<0.000000e+00> : vector<128x128xf32>
    %3 = tpu.matmul %1, %2, %cst {dimension_numbers = #tpu.dot_dimension_numbers<[1], [0], [0], [1], [0, 0, 1, 1], [], []>} : vector<128x128xbf16>, vector<128x128xbf16>, vector<128x128xf32> -> vector<128x128xf32>
    %c0_3 = arith.constant 0 : index
    %c0_4 = arith.constant 0 : index
    %4 = vector.load %arg3[%c0_3, %c0_4] : memref<1x128xf32, #tpu.memory_space<vmem>>, vector<1x128xf32>
    %5 = vector.broadcast %4 : vector<1x128xf32> to vector<128x128xf32>
    %6 = arith.addf %3, %5 : vector<128x128xf32>
    %cst_5 = arith.constant 0.000000e+00 : f32
    %7 = vector.broadcast %cst_5 : f32 to vector<128x128xf32>
    %8 = arith.maximumf %6, %7 : vector<128x128xf32>
    %9 = arith.truncf %8 : vector<128x128xf32> to vector<128x128xbf16>
    %c0_6 = arith.constant 0 : index
    %c0_7 = arith.constant 0 : index
    %10 = vector.load %arg4[%c0_6, %c0_7] : memref<128x128xbf16, #tpu.memory_space<vmem>>, vector<128x128xbf16>
    %cst_8 = arith.constant dense<0.000000e+00> : vector<128x128xf32>
    %11 = tpu.matmul %9, %10, %cst_8 {dimension_numbers = #tpu.dot_dimension_numbers<[1], [0], [0], [1], [0, 0, 1, 1], [], []>} : vector<128x128xbf16>, vector<128x128xbf16>, vector<128x128xf32> -> vector<128x128xf32>
    %c0_9 = arith.constant 0 : index
    %c0_10 = arith.constant 0 : index
    %12 = vector.load %arg5[%c0_9, %c0_10] : memref<1x128xf32, #tpu.memory_space<vmem>>, vector<1x128xf32>
    %13 = vector.broadcast %12 : vector<1x128xf32> to vector<128x128xf32>
    %14 = arith.addf %11, %13 : vector<128x128xf32>
    %15 = math.tanh %14 : vector<128x128xf32>
    %c0_11 = arith.constant 0 : index
    %c0_12 = arith.constant 0 : index
    %16 = vector.load %arg6[%c0_11, %c0_12] : memref<128x128xf32, #tpu.memory_space<vmem>>, vector<128x128xf32>
    tpu.vector_store %arg6[%c0_11, %c0_12], %15 {strides = array<i32>} : memref<128x128xf32, #tpu.memory_space<vmem>>, vector<128x128xf32>,
    return
  }
  func.func @transform_0(%arg0: i32) -> (i32, i32) {
    %c0_i32 = arith.constant 0 : i32
    %c0_i32_0 = arith.constant 0 : i32
    return %arg0, %c0_i32 : i32, i32
  }
  func.func @transform_1(%arg0: i32) -> (i32, i32) {
    %c0_i32 = arith.constant 0 : i32
    %c0_i32_0 = arith.constant 0 : i32
    %c0_i32_1 = arith.constant 0 : i32
    return %c0_i32, %c0_i32_0 : i32, i32
  }
  func.func @transform_2(%arg0: i32) -> (i32, i32) {
    %c0_i32 = arith.constant 0 : i32
    %c0_i32_0 = arith.constant 0 : i32
    %c0_i32_1 = arith.constant 0 : i32
    return %c0_i32, %c0_i32_0 : i32, i32
  }
  func.func @transform_3(%arg0: i32) -> (i32, i32) {
    %c0_i32 = arith.constant 0 : i32
    %c0_i32_0 = arith.constant 0 : i32
    %c0_i32_1 = arith.constant 0 : i32
    return %c0_i32, %c0_i32_0 : i32, i32
  }
  func.func @transform_4(%arg0: i32) -> (i32, i32) {
    %c0_i32 = arith.constant 0 : i32
    %c0_i32_0 = arith.constant 0 : i32
    %c0_i32_1 = arith.constant 0 : i32
    return %c0_i32, %c0_i32_0 : i32, i32
  }
  func.func @transform_5(%arg0: i32) -> (i32, i32) {
    %c0_i32 = arith.constant 0 : i32
    %c0_i32_0 = arith.constant 0 : i32
    return %arg0, %c0_i32 : i32, i32
  }
}

</mosaic_0001>

<bundles_post_ra>
// kernel: tpu_custom_call.1
= control target key start
LH: loop header
LB: loop body
LE: loop exit
PB: predicated region body
PF: predicated region fallthrough
CT: control target
= control target key end

     0   :  { %10 = vsyncpa [#allocation3], 0  ;;  %s1331_s0 = inlined_call_operand.hbm [shape: f32[250,128], index: 0, kind: input, shape index: {}]   ;;  %s1332_s1 = inlined_call_operand.hbm [shape: bf16[128,128], index: 1, kind: input, shape index: {}]   ;;  %s1333_s2 = inlined_call_operand.vmem [shape: f32[1,128], index: 2, kind: input, shape index: {}]   ;;  %s1334_s3 = inlined_call_operand.hbm [shape: bf16[128,128], index: 3, kind: input, shape index: {}]   ;;  %s1335_s4 = inlined_call_operand.vmem [shape: f32[1,128], index: 4, kind: input, shape index: {}]   ;;  %s1336_s5 = inlined_call_operand.hbm [shape: f32[250,128], index: 5, kind: output, shape index: {}]  }
   0x1   :  { %12 = vsyncpa [#allocation3 + $0x1], 0 }
   0x2   :  { %13 = vsyncpa [#allocation6], 0 }
   0x3   :  { %14 = vsyncpa [#allocation4], 0 }
   0x4   :  { %16 = vsyncpa [#allocation4 + $0x1], 0  ;;  %s1125_s18 = smov 0   ;;  %s1127_s19 = smov 0  }
   0x5   :  { %s1129_s20 = smov 0   ;;  %s1131_s21 = smov 0  }
   0x6 LB: > { %s1146_s22 = sadd.s32 4294967295, %s1085_s21   ;;  %s702_s23 = sadd.s32 4294967294, %s1085_s21   ;;  %s1085_s21 = sphi %s1131_s21, %s1346_s21   ;;  %s1081_s20 = sphi %s1129_s20, %s1345_s20   ;;  %s1077_s19 = sphi %s1127_s19, %s1344_s19   ;;  %s1073_s18 = sphi %s1125_s18, %s1343_s18  }
   0x7   : > { %p42_p0 = scmp.ne.s32.totalorder %s1077_s19, %s1073_s18  ;;  %p43_p1 = scmp.eq.s32.totalorder %s1146_s22, 0 }
   0x8   : > { %p150_p2 = scmp.eq.s32.totalorder %s1146_s22, 1  ;;  %p156_p3 = scmp.eq.s32.totalorder %s702_s23, 1 }
   0x9   : > { %p1155_p4 = por %p43_p1, %p42_p0  ;;  %p703_p5 = scmp.ge.s32.totalorder %s1085_s21, 1 }
   0xa   : > { %p1160_p6 = por %p156_p3, %p42_p0  ;;  %p163_p7 = scmp.lt.s32.totalorder %s1085_s21, 3 }
   0xb   : > { %s174_s28 = sshll.u32 %s1332_s1, 4  ;;  %s1087_s30 = smov [#allocation5]   ;;  %s175_s28 = int_to_ptr.hbm [resolvable:$true] %s174_s28 }
   0xc   : > { %p1168_p8 = pnand %p703_p5, %p163_p7  ;;  %s176_s6 = sshll.u32 %s1087_s30, 4  ;;  %s177_s6 = int_to_ptr.vmem [resolvable:$true] %s176_s6 }
   0xd   : > { %s191_s9 = sshll.u32 %s1334_s3, 4  ;;  %s1088_s10 = smov 64   ;;  %s192_s9 = int_to_ptr.hbm [resolvable:$true] %s191_s9 }
   0xe   : > { %p830_p9 = pneg %p1168_p8  ;;  %s1089_s11 = smov 4  }
   0xf   : > { %s1090_s12 = smov [#allocation7]   ;;  %s1181_s14 = sadd.s32 1, %s1085_s21  }
  0x10   : > { %p831_p10 = pnand %p830_p9, %p43_p1  ;;  %s193_s13 = sshll.u32 %s1090_s12, 4  ;;  %s194_s13 = int_to_ptr.vmem [resolvable:$true] %s193_s13 }
  0x11   : > { %s29_s15 = sadd.s32 1, %s1081_s20  ;;  %s26_s16 = ssub.s32 %s1085_s21, %s1181_s14 }
  0x12   : > { %833 = dma.hbm_to_vmem [thread:$0]  (!%p831_p10), %s175_s28, 1024, %s177_s6, [#allocation6], %s1088_s10, %s1088_s10, %s1089_s11  }
  0x13   : > { %836 = dma.hbm_to_vmem [thread:$0]  (!%p831_p10), %s192_s9, 1024, %s194_s13, [#allocation6], %s1088_s10, %s1088_s10, %s1089_s11  }
  0x14   : > { %p36_p12 = scmp.ne.s32.totalorder %s1081_s20, %s1077_s19  ;;  %p27_p13 = scmp.eq.s32.totalorder %s26_s16, 0 }
  0x15   : > { %p37_p0 = scmp.eq.s32.totalorder %s1085_s21, 0  ;;  %p847_p5 = scmp.lt.s32.totalorder %s1085_s21, 2 }
  0x16   : > { %p1191_p3 = por %p150_p2, %p36_p12  ;;  %s210_s26 = sand.u32 1, %s1081_s20  }
  0x17   : > { %s1197_s23 = scalar_select %p27_p13, %s1081_s20, %s29_s15  }
  0x18   : > { %p38_p7 = por %p37_p0, %p36_p12  ;;  %s707_s27 = sshll.u32 %s210_s26, 7 }
  0x19   : > { %s784_s28 = sshll.u32 %s1085_s21, 7  ;;  %s214_s8 = scalar_lea.vmem [#allocation2], %s707_s27 }
  0x1a   : > { %s219_s7 = scalar_lea.hbm %s1331_s0, %s784_s28  ;;  %s222_s9 = sshll.u32 %s214_s8, 4  ;;  %s223_s9 = int_to_ptr.vmem [resolvable:$true] %s222_s9 }
  0x1b   : > { %s220_s10 = sshll.u32 %s219_s7, 4  ;;  %p1204_p2 = pnand %p847_p5, %p38_p7  ;;  %s221_s10 = int_to_ptr.hbm [resolvable:$true] %s220_s10 }
  0x1c   : > { %s211_s12 = scalar_lea.sflag [#allocation3], %s210_s26  ;;  %s985_s13 = sshra.s32 %s221_s10, 4  ;;  %s986_s13 = int_to_ptr.hbm [resolvable:$true] %s985_s13 }
  0x1d   : > { %s987_s15 = scalar_lea.hbm %s986_s13, 128  ;;  %p989_p10 = pneg %p1204_p2 }
  0x1e   : > { %p988_p9 = scmp.ne.s32.totalorder %s986_s13, %s987_s15  ;;  %s992_s28 = scalar_lea.hbm %s1331_s0, 256 }
  0x1f   : > { %p993_p0 = scmp.lt.s32.totalorder %s986_s13, %s1331_s0  ;;  %p994_p5 = scmp.lt.s32.totalorder %s992_s28, %s987_s15 }
  0x20   : > { %p990_p12 = pnand %p989_p10, %p988_p9 }
  0x21   : > { %p995_p7 = por %p994_p5, %p993_p0 }
  0x22   : > { %p991_p13 = pneg %p990_p12 }
  0x24   : > { %p996_p11 = pnand %p995_p7, %p991_p13 }
  0x26   : > { %999 = shalt.err (!%p996_p11)
}
  0x27   : > { %s1091_s26 = smov 128   ;;  %s1092_s7 = smov 8  }
  0x28   : > { %840 = dma.hbm_to_vmem [thread:$0]  (!%p1204_p2), %s221_s10, 2048, %s223_s9, %s211_s12, %s1091_s26, %s1091_s26, %s1092_s7  }
  0x29   : > { %234 = sbr.rel (%p1168_p8) target bundleno = 428 (0x1ac), region = 40  ;;  %s1221_s8 = sand.u32 (!%p1168_p8), 1, %s1077_s19  }
  0x2a   : > { %s711_s13 = sshll.u32 (!%p1168_p8), %s1221_s8, 7  ;;  %s237_s15 = scalar_lea.sflag (!%p1168_p8), [#allocation3], %s1221_s8 }
  0x2b   : > { %s1227_s16 = scalar_lea.vmem (!%p1168_p8), [#allocation2], %s711_s13 }
  0x2e   : > { %1060 = dma.done.wait (%p1155_p4), %s237_s15, 2048  }
  0x2f   : > { %1062 = vsyncadd (%p1155_p4), %s237_s15, 4294965248 }
  0x30   : > { %1064 = dma.done.wait (%p43_p1), [#allocation6], 2048  }
  0x31   : > { %1066 = vsyncadd (%p43_p1), [#allocation6], 4294965248  ;;  %v792_v0 = vld [vmem:[#allocation5 + $0x38] sm:$0xff]  ;;  %v791_v1 = vld [vmem:[#allocation5 + $0x30] sm:$0xff]  ;;  %s1265_s11 = scalar_lea.vmem [#allocation8], %s711_s13  ;;  %s801_s12 = sshll.u32 %s1146_s22, 7 }
  0x32   : > { %372 = vmatpush.bf16.msra.mxu0 %v792_v0  ;;  %802 = vmatpush.bf16.msra.mxu2 %v792_v0  ;;  %v790_v2 = vld [vmem:[#allocation5 + $0x28] sm:$0xff]  ;;  %v789_v3 = vld [vmem:[#allocation5 + $0x20] sm:$0xff]  ;;  %v788_v4 = vld [vmem:[#allocation5 + $0x18] sm:$0xff]  ;;  %s606_s30 = scalar_lea.hbm %s1336_s5, %s801_s12  ;;  %s607_s6 = sshll.u32 %s1265_s11, 4  ;;  %s608_s6 = int_to_ptr.vmem [resolvable:$true] %s607_s6 }
  0x33   : > { %v787_v5 = vld [vmem:[#allocation5 + $0x10] sm:$0xff]  ;;  %v786_v6 = vld [vmem:[#allocation5 + $0x8] sm:$0xff]  ;;  %v785_v7 = vld [vmem:[#allocation5] sm:$0xff]  ;;  %s609_s26 = sshll.u32 %s606_s30, 4  ;;  %s595_s7 = scalar_lea.sflag [#allocation4], %s1221_s8  ;;  %s610_s26 = int_to_ptr.hbm [resolvable:$true] %s609_s26 }
  0x34   : > { %v280_v8 = vld [vmem:[%s1227_s16] sm:$0xff]  ;;  %v281_v9 = vld [vmem:[%s1227_s16 + $0x8] sm:$0xff]  ;;  %v282_v14 = vld [vmem:[%s1227_s16 + $0x10] sm:$0xff]  ;;  %s1029_s13 = sshra.s32 %s610_s26, 4  ;;  %s1035_s24 = scalar_lea.hbm %s1336_s5, 256  ;;  %s1030_s13 = int_to_ptr.hbm [resolvable:$true] %s1029_s13 }
  0x35   : > { %v288_v10 = vld [vmem:[%s1227_s16 + $0x40] sm:$0xff]  ;;  %v289_v11 = vld [vmem:[%s1227_s16 + $0x48] sm:$0xff]  ;;  %v296_v12 = vpack.c.bf16 %v281_v9, %v280_v8  ;;  %v283_v15 = vld [vmem:[%s1227_s16 + $0x18] sm:$0xff]  ;;  %s1031_s22 = scalar_lea.hbm %s1030_s13, 128  ;;  %p1036_p11 = scmp.lt.s32.totalorder %s1030_s13, %s1336_s5 }
  0x36   : > { %373 = vmatpush.bf16.msra.mxu0 %v791_v1  ;;  %803 = vmatpush.bf16.msra.mxu2 %v791_v1  ;;  %v300_v13 = vpack.c.bf16 %v289_v11, %v288_v10  ;;  %v290_v16 = vld [vmem:[%s1227_s16 + $0x50] sm:$0xff]  ;;  %v291_v17 = vld [vmem:[%s1227_s16 + $0x58] sm:$0xff]  ;;  %v297_v18 = vpack.c.bf16 %v283_v15, %v282_v14  ;;  %v798_v22 = vld [vmem:[#allocation7 + $0x28] sm:$0xff]  ;;  %p1032_p1 = scmp.ne.s32.totalorder %s1030_s13, %s1031_s22  ;;  %p1037_p2 = scmp.lt.s32.totalorder %s1035_s24, %s1031_s22 }
  0x37   : > { %v301_v19 = vpack.c.bf16 %v291_v17, %v290_v16  ;;  %v800_v20 = vld [vmem:[#allocation7 + $0x38] sm:$0xff]  ;;  %v799_v21 = vld [vmem:[#allocation7 + $0x30] sm:$0xff]  ;;  %v284_v23 = vld [vmem:[%s1227_s16 + $0x20] sm:$0xff] }
  0x38   : > { %513 = vmatpush.bf16.msra.mxu1 %v800_v20  ;;  %810 = vmatpush.bf16.msra.mxu3 %v800_v20  ;;  %v285_v24 = vld [vmem:[%s1227_s16 + $0x28] sm:$0xff]  ;;  %v292_v25 = vld [vmem:[%s1227_s16 + $0x60] sm:$0xff]  ;;  %v286_v30 = vld [vmem:[%s1227_s16 + $0x30] sm:$0xff]  ;;  %p1033_p4 = pnand %p1032_p1, %p1191_p3  ;;  %p1038_p9 = por %p1037_p2, %p1036_p11 }
  0x39   : > { %v293_v26 = vld [vmem:[%s1227_s16 + $0x68] sm:$0xff]  ;;  %v797_v27 = vld [vmem:[#allocation7 + $0x20] sm:$0xff]  ;;  %v298_v28 = vpack.c.bf16 %v285_v24, %v284_v23  ;;  %v287_v31 = vld [vmem:[%s1227_s16 + $0x38] sm:$0xff] }
  0x3a   : > { %374 = vmatpush.bf16.msra.mxu0 %v790_v2  ;;  %804 = vmatpush.bf16.msra.mxu2 %v790_v2  ;;  %v302_v29 = vpack.c.bf16 %v293_v26, %v292_v25  ;;  %v294_v32 = vld [vmem:[%s1227_s16 + $0x70] sm:$0xff]  ;;  %v295_v33 = vld [vmem:[%s1227_s16 + $0x78] sm:$0xff]  ;;  %v299_v34 = vpack.c.bf16 %v287_v31, %v286_v30  ;;  %v794_v38 = vld [vmem:[#allocation7 + $0x8] sm:$0xff]  ;;  %p1034_p8 = pneg %p1033_p4 }
  0x3b   : > { %v303_v35 = vpack.c.bf16 %v295_v33, %v294_v32  ;;  %v796_v36 = vld [vmem:[#allocation7 + $0x18] sm:$0xff]  ;;  %v795_v37 = vld [vmem:[#allocation7 + $0x10] sm:$0xff]  ;;  %v793_v39 = vld [vmem:[#allocation7] sm:$0xff] }
  0x3c   : > { %514 = vmatpush.bf16.msra.mxu1 %v799_v21  ;;  %811 = vmatpush.bf16.msra.mxu3 %v799_v21  ;;  %v891_v41 = vld [vmem:[%s1333_s2] ss:$0 sm:$0xff]  ;;  %p1039_p10 = pnand %p1038_p9, %p1034_p8 }
  0x3d   : > { %v1259_v33 = vld [vmem:[%s1335_s4] ss:$0 sm:$0xff] }
  0x3e   : > { %375 = vmatpush.bf16.msra.mxu0 %v789_v3  ;;  %805 = vmatpush.bf16.msra.mxu2 %v789_v3 }
  0x40   : > { %515 = vmatpush.bf16.msra.mxu1 %v798_v22  ;;  %812 = vmatpush.bf16.msra.mxu3 %v798_v22 }
  0x42   : > { %376 = vmatpush.bf16.msra.mxu0 %v788_v4  ;;  %806 = vmatpush.bf16.msra.mxu2 %v788_v4 }
  0x44   : > { %516 = vmatpush.bf16.msra.mxu1 %v797_v27  ;;  %813 = vmatpush.bf16.msra.mxu3 %v797_v27 }
  0x46   : > { %377 = vmatpush.bf16.msra.mxu0 %v787_v5  ;;  %807 = vmatpush.bf16.msra.mxu2 %v787_v5 }
  0x48   : > { %517 = vmatpush.bf16.msra.mxu1 %v796_v36  ;;  %814 = vmatpush.bf16.msra.mxu3 %v796_v36 }
  0x4a   : > { %378 = vmatpush.bf16.msra.mxu0 %v786_v6  ;;  %808 = vmatpush.bf16.msra.mxu2 %v786_v6 }
  0x4c   : > { %518 = vmatpush.bf16.msra.mxu1 %v795_v37  ;;  %815 = vmatpush.bf16.msra.mxu3 %v795_v37 }
  0x4e   : > { %379 = vmatpush.bf16.msra.mxu0 %v785_v7  ;;  %809 = vmatpush.bf16.msra.mxu2 %v785_v7 }
  0x50   : > { %519 = vmatpush.bf16.msra.mxu1 %v794_v38  ;;  %816 = vmatpush.bf16.msra.mxu3 %v794_v38 }
  0x51   : > { %380 = vmatmul.bf16.vlgmr.msra.gmra.mxu0 %v296_v12  ;;  %400 = vmatmul.bf16.vlgmr.msra.gmra.mxu2 %v300_v13 }
  0x54   : > { %520 = vmatpush.bf16.msra.mxu1 %v793_v39  ;;  %817 = vmatpush.bf16.msra.mxu3 %v793_v39 }
  0x61   : > { %385 = vmatmul.bf16.gmra.mxu0 %v297_v18  ;;  %405 = vmatmul.bf16.gmra.mxu2 %v301_v19 }
  0x71   : > { %390 = vmatmul.bf16.gmra.mxu0 %v298_v28  ;;  %410 = vmatmul.bf16.gmra.mxu2 %v302_v29 }
  0x81   : > { %395 = vmatmul.bf16.gmra.mxu0 %v299_v34  ;;  %415 = vmatmul.bf16.gmra.mxu2 %v303_v35 }
  0xce   : > { %v381_v40 = vpop.f32.mrf.mxu0 }
  0xcf   : > { %v382_v42 = vadd.f32 %v891_v41, %v381_v40 }
  0xd1   : > { %v421_v45 = vmax.f32 %v382_v42, 0.0 }
  0xd4   : > { %v401_v43 = vpop.f32.mrf.mxu2 }
  0xd5   : > { %v402_v48 = vadd.f32 %v891_v41, %v401_v43 }
  0xd6   : > { %v383_v44 = vpop.f32.mrf.mxu0 }
  0xd7   : > { %v384_v46 = vadd.f32 %v891_v41, %v383_v44  ;;  %v429_v53 = vmax.f32 %v402_v48, 0.0 }
  0xd9   : > { %v422_v47 = vmax.f32 %v384_v46, 0.0 }
  0xdb   : > { %v437_v49 = vpack.c.bf16 %v422_v47, %v421_v45 }
  0xdc   : > { %v403_v50 = vpop.f32.mrf.mxu2 }
  0xdd   : > { %v404_v51 = vadd.f32 %v891_v41, %v403_v50  ;;  %521 = vmatmul.bf16.vlgmr.msra.gmra.mxu1 %v437_v49 }
  0xde   : > { %v386_v52 = vpop.f32.mrf.mxu0 }
  0xdf   : > { %v430_v54 = vmax.f32 %v404_v51, 0.0  ;;  %v387_v56 = vadd.f32 %v891_v41, %v386_v52 }
  0xe1   : > { %v441_v55 = vpack.c.bf16 %v430_v54, %v429_v53  ;;  %v423_v59 = vmax.f32 %v387_v56, 0.0 }
  0xe3   : > { %541 = vmatmul.bf16.vlgmr.msra.gmra.mxu3 %v441_v55 }
  0xe4   : > { %v406_v57 = vpop.f32.mrf.mxu2 }
  0xe5   : > { %v407_v62 = vadd.f32 %v891_v41, %v406_v57 }
  0xe6   : > { %v388_v58 = vpop.f32.mrf.mxu0 }
  0xe7   : > { %v389_v60 = vadd.f32 %v891_v41, %v388_v58  ;;  %v431_v3 = vmax.f32 %v407_v62, 0.0 }
  0xe9   : > { %v424_v61 = vmax.f32 %v389_v60, 0.0 }
  0xeb   : > { %v438_v63 = vpack.c.bf16 %v424_v61, %v423_v59 }
  0xec   : > { %v408_v0 = vpop.f32.mrf.mxu2 }
  0xed   : > { %v409_v1 = vadd.f32 %v891_v41, %v408_v0  ;;  %526 = vmatmul.bf16.gmra.mxu1 %v438_v63 }
  0xee   : > { %v391_v2 = vpop.f32.mrf.mxu0 }
  0xef   : > { %v432_v4 = vmax.f32 %v409_v1, 0.0  ;;  %v392_v6 = vadd.f32 %v891_v41, %v391_v2 }
  0xf1   : > { %v442_v5 = vpack.c.bf16 %v432_v4, %v431_v3  ;;  %v425_v9 = vmax.f32 %v392_v6, 0.0 }
  0xf3   : > { %546 = vmatmul.bf16.gmra.mxu3 %v442_v5 }
  0xf4   : > { %v411_v7 = vpop.f32.mrf.mxu2 }
  0xf5   : > { %v412_v12 = vadd.f32 %v891_v41, %v411_v7 }
  0xf6   : > { %v393_v8 = vpop.f32.mrf.mxu0 }
  0xf7   : > { %v394_v10 = vadd.f32 %v891_v41, %v393_v8  ;;  %v433_v17 = vmax.f32 %v412_v12, 0.0 }
  0xf9   : > { %v426_v11 = vmax.f32 %v394_v10, 0.0 }
  0xfb   : > { %v439_v13 = vpack.c.bf16 %v426_v11, %v425_v9 }
  0xfc   : > { %v413_v14 = vpop.f32.mrf.mxu2 }
  0xfd   : > { %v414_v15 = vadd.f32 %v891_v41, %v413_v14  ;;  %531 = vmatmul.bf16.gmra.mxu1 %v439_v13 }
  0xfe   : > { %v396_v16 = vpop.f32.mrf.mxu0 }
  0xff   : > { %v434_v18 = vmax.f32 %v414_v15, 0.0  ;;  %v397_v20 = vadd.f32 %v891_v41, %v396_v16 }
 0x101   : > { %v443_v19 = vpack.c.bf16 %v434_v18, %v433_v17  ;;  %v427_v23 = vmax.f32 %v397_v20, 0.0 }
 0x103   : > { %551 = vmatmul.bf16.gmra.mxu3 %v443_v19 }
 0x104   : > { %v416_v21 = vpop.f32.mrf.mxu2 }
 0x105   : > { %v417_v26 = vadd.f32 %v891_v41, %v416_v21 }
 0x106   : > { %v398_v22 = vpop.f32.mrf.mxu0 }
 0x107   : > { %v399_v24 = vadd.f32 %v891_v41, %v398_v22  ;;  %v435_v30 = vmax.f32 %v417_v26, 0.0 }
 0x109   : > { %v428_v25 = vmax.f32 %v399_v24, 0.0 }
 0x10b   : > { %v440_v27 = vpack.c.bf16 %v428_v25, %v427_v23 }
 0x10c   : > { %v418_v28 = vpop.f32.mrf.mxu2 }
 0x10d   : > { %v419_v29 = vadd.f32 %v891_v41, %v418_v28  ;;  %536 = vmatmul.bf16.gmra.mxu1 %v440_v27 }
 0x10f   : > { %v436_v31 = vmax.f32 %v419_v29, 0.0 }
 0x111   : > { %v444_v32 = vpack.c.bf16 %v436_v31, %v435_v30 }
 0x113   : > { %556 = vmatmul.bf16.gmra.mxu3 %v444_v32 }
 0x15a   : > { %v522_v34 = vpop.f32.mrf.mxu1 }
 0x15b   : > { %v523_v35 = vadd.f32 %v1259_v33, %v522_v34 }
 0x15d   : > { %893 = vtanh.f32 %v523_v35 }
 0x162   : > { %v524_v36 = vpop.f32.mrf.mxu1 }
 0x163   : > { %v894_v37 = vpop.eup %893  ;;  %v525_v38 = vadd.f32 %v1259_v33, %v524_v36 }
 0x164   : > { %578 = vst [vmem:[%s1265_s11] sm:$0xff] %v894_v37 }
 0x165   : > { %895 = vtanh.f32 %v525_v38 }
 0x166   : > { %v542_v39 = vpop.f32.mrf.mxu3 }
 0x167   : > { %v543_v40 = vadd.f32 %v1259_v33, %v542_v39 }
 0x169   : > { %897 = vtanh.f32 %v543_v40 }
 0x16a   : > { %v527_v41 = vpop.f32.mrf.mxu1 }
 0x16b   : > { %v896_v42 = vpop.eup %895  ;;  %v528_v43 = vadd.f32 %v1259_v33, %v527_v41 }
 0x16c   : > { %579 = vst [vmem:[%s1265_s11 + $0x8] sm:$0xff] %v896_v42 }
 0x16d   : > { %899 = vtanh.f32 %v528_v43 }
 0x16e   : > { %v544_v44 = vpop.f32.mrf.mxu3 }
 0x16f   : > { %v898_v45 = vpop.eup %897  ;;  %v545_v46 = vadd.f32 %v1259_v33, %v544_v44 }
 0x170   : > { %586 = vst [vmem:[%s1265_s11 + $0x40] sm:$0xff] %v898_v45 }
 0x171   : > { %901 = vtanh.f32 %v545_v46 }
 0x172   : > { %v529_v47 = vpop.f32.mrf.mxu1 }
 0x173   : > { %v900_v48 = vpop.eup %899  ;;  %v530_v49 = vadd.f32 %v1259_v33, %v529_v47 }
 0x174   : > { %580 = vst [vmem:[%s1265_s11 + $0x10] sm:$0xff] %v900_v48 }
 0x175   : > { %903 = vtanh.f32 %v530_v49 }
 0x176   : > { %v547_v50 = vpop.f32.mrf.mxu3 }
 0x177   : > { %v902_v51 = vpop.eup %901  ;;  %v548_v52 = vadd.f32 %v1259_v33, %v547_v50 }
 0x178   : > { %587 = vst [vmem:[%s1265_s11 + $0x48] sm:$0xff] %v902_v51 }
 0x179   : > { %905 = vtanh.f32 %v548_v52 }
 0x17a   : > { %v532_v53 = vpop.f32.mrf.mxu1 }
 0x17b   : > { %v904_v54 = vpop.eup %903  ;;  %v533_v55 = vadd.f32 %v1259_v33, %v532_v53 }
 0x17c   : > { %581 = vst [vmem:[%s1265_s11 + $0x18] sm:$0xff] %v904_v54 }
 0x17d   : > { %907 = vtanh.f32 %v533_v55 }
 0x17e   : > { %v549_v56 = vpop.f32.mrf.mxu3 }
 0x17f   : > { %v906_v57 = vpop.eup %905  ;;  %v550_v58 = vadd.f32 %v1259_v33, %v549_v56 }
 0x180   : > { %588 = vst [vmem:[%s1265_s11 + $0x50] sm:$0xff] %v906_v57 }
 0x181   : > { %909 = vtanh.f32 %v550_v58 }
 0x182   : > { %v534_v59 = vpop.f32.mrf.mxu1 }
 0x183   : > { %v908_v60 = vpop.eup %907  ;;  %v535_v61 = vadd.f32 %v1259_v33, %v534_v59 }
 0x184   : > { %582 = vst [vmem:[%s1265_s11 + $0x20] sm:$0xff] %v908_v60 }
 0x185   : > { %911 = vtanh.f32 %v535_v61 }
 0x186   : > { %v552_v62 = vpop.f32.mrf.mxu3 }
 0x187   : > { %v910_v63 = vpop.eup %909  ;;  %v553_v0 = vadd.f32 %v1259_v33, %v552_v62 }
 0x188   : > { %589 = vst [vmem:[%s1265_s11 + $0x58] sm:$0xff] %v910_v63 }
 0x189   : > { %913 = vtanh.f32 %v553_v0 }
 0x18a   : > { %v537_v1 = vpop.f32.mrf.mxu1 }
 0x18b   : > { %v912_v2 = vpop.eup %911  ;;  %v538_v3 = vadd.f32 %v1259_v33, %v537_v1 }
 0x18c   : > { %583 = vst [vmem:[%s1265_s11 + $0x28] sm:$0xff] %v912_v2 }
 0x18d   : > { %915 = vtanh.f32 %v538_v3 }
 0x18e   : > { %v554_v4 = vpop.f32.mrf.mxu3 }
 0x18f   : > { %v914_v5 = vpop.eup %913  ;;  %v555_v6 = vadd.f32 %v1259_v33, %v554_v4 }
 0x190   : > { %590 = vst [vmem:[%s1265_s11 + $0x60] sm:$0xff] %v914_v5 }
 0x191   : > { %917 = vtanh.f32 %v555_v6 }
 0x192   : > { %v539_v7 = vpop.f32.mrf.mxu1 }
 0x193   : > { %v916_v8 = vpop.eup %915  ;;  %v540_v9 = vadd.f32 %v1259_v33, %v539_v7 }
 0x194   : > { %584 = vst [vmem:[%s1265_s11 + $0x30] sm:$0xff] %v916_v8 }
 0x195   : > { %919 = vtanh.f32 %v540_v9 }
 0x196   : > { %v557_v10 = vpop.f32.mrf.mxu3 }
 0x197   : > { %v918_v11 = vpop.eup %917  ;;  %v558_v12 = vadd.f32 %v1259_v33, %v557_v10 }
 0x198   : > { %591 = vst [vmem:[%s1265_s11 + $0x68] sm:$0xff] %v918_v11 }
 0x199   : > { %921 = vtanh.f32 %v558_v12 }
 0x19b   : > { %v920_v13 = vpop.eup %919 }
 0x19c   : > { %585 = vst [vmem:[%s1265_s11 + $0x38] sm:$0xff] %v920_v13 }
 0x19e   : > { %v559_v14 = vpop.f32.mrf.mxu3 }
 0x19f   : > { %v922_v15 = vpop.eup %921  ;;  %v560_v16 = vadd.f32 %v1259_v33, %v559_v14 }
 0x1a0   : > { %592 = vst [vmem:[%s1265_s11 + $0x70] sm:$0xff] %v922_v15 }
 0x1a1   : > { %923 = vtanh.f32 %v560_v16 }
 0x1a7   : > { %v924_v17 = vpop.eup %923 }
 0x1a8   : > { %593 = vst [vmem:[%s1265_s11 + $0x78] sm:$0xff] %v924_v17 }
 0x1a9   : > { %1042 = shalt.err (!%p1039_p10)
}
 0x1aa   : > { %s1093_s8 = smov 128   ;;  %s1094_s10 = smov 8  }
 0x1ab   : > { %828 = dma.vmem_to_hbm [thread:$0]  (%p1191_p3), %s608_s6, 2048, %s610_s26, %s595_s7, %s1093_s8, %s1093_s8, %s1094_s10  }
 0x1ac PF: > { %s624_s11 = sand.u32 1, %s1073_s18   ;;  %p1342_p12 = scmp.ge.s32.totalorder %s1085_s21, 2 }
 0x1ad   : > { %s625_s12 = scalar_lea.sflag [#allocation4], %s624_s11 }
 0x1ae   : > { %p842_p13 = pnand %p1342_p12, %p1160_p6 }
 0x1b0   : > { %p843_p0 = pneg %p842_p13 }
 0x1b2   : > { %1068 = dma.done.wait (%p843_p0), %s625_s12, 2048  }
 0x1b3   : > { %1070 = vsyncadd (%p843_p0), %s625_s12, 4294965248  ;;  %p19_p5 = scmp.ge.s32.totalorder %s1181_s14, 4   ;;  %s1343_s18 = smov %s1077_s19 }
 0x1b4   : > { %s1344_s19 = smov %s1081_s20  ;;  %s1345_s20 = smov %s1197_s23 }
 0x1b5   : > { %s1346_s21 = smov %s1181_s14  ;;  %21 = sbr.rel (!%p19_p5) target bundleno = 6 (0x6), region = 93 }
 0x1ba   :  { %631 = vsyncpa [#allocation3], 1 }
 0x1bb   :  { %633 = vsyncpa [#allocation3 + $0x1], 1 }
 0x1bc   :  { %634 = vsyncpa [#allocation6], 1 }
 0x1bd   :  { %635 = vsyncpa [#allocation4], 1 }
 0x1be   :  { %637 = vsyncpa [#allocation4 + $0x1], 1 }

</bundles_post_ra>
